<compile_context>
chip_gen: v6e
topology: v6e:2x2x1
jax: 0.10.0
libtpu: 0.0.40
codegen_flags: <defaults>
</compile_context>

<pallas_src>
import math

import jax
import jax.numpy as jnp
from jax.experimental import pallas as pl
from jax.experimental.pallas import tpu as pltpu

SQRT_2_OVER_PI = math.sqrt(2.0 / math.pi)
GELU_COEFF = 0.044715
C_INNER = SQRT_2_OVER_PI * GELU_COEFF          # folded constant

_TARGET_BLOCK_BYTES = 2 * 1024 * 1024          # ~2 MiB per block
_WIDTH_CANDIDATES = (4096, 2048, 1024, 512, 256, 128)


def _gelu_kernel(x_ref, o_ref):
    x = x_ref[...]
    # 0.5 * x * (1 + tanh(sqrt(2/pi) * (x + 0.044715 * x^3))), rewritten to
    # cut ~2 VPU ops/elem; Python-float constants keep the compute in x.dtype.
    x_sq = x * x
    inner = x * (SQRT_2_OVER_PI + C_INNER * x_sq)
    o_ref[...] = x * (0.5 + 0.5 * jnp.tanh(inner))


def _choose_width(n):
    """Pick a wide lane dim W (multiple of 128); pad only if 128 doesn't divide n."""
    for w in _WIDTH_CANDIDATES:
        if n % w == 0:
            return w, 0
    return 128, (-n) % 128


def gelu(x):
    """Tanh-approximation GELU, elementwise, any shape/dtype."""
    orig_shape = x.shape
    orig_dtype = x.dtype
    itemsize = jnp.dtype(orig_dtype).itemsize

    n = math.prod(orig_shape)
    flat = x.reshape(-1)
    w, pad = _choose_width(n)
    if pad:
        # Rare path: total element count is not a multiple of 128.
        flat = jnp.pad(flat, (0, pad))
    rows = flat.shape[0] // w
    x2 = flat.reshape(rows, w)

    # Row tile sized for ~2 MiB blocks; multiple of 8 sublanes (or full rows).
    tr = max(8, _TARGET_BLOCK_BYTES // (w * itemsize))
    tr = (tr // 8) * 8
    tile_rows = rows if tr >= rows else tr
    grid = (pl.cdiv(rows, tile_rows),)   # ragged last block handled by Pallas

    cost = pl.CostEstimate(
        flops=7 * n, transcendentals=n, bytes_accessed=2 * n * itemsize)

    out = pl.pallas_call(
        _gelu_kernel,
        out_shape=jax.ShapeDtypeStruct((rows, w), orig_dtype),
        grid_spec=pltpu.PrefetchScalarGridSpec(
            num_scalar_prefetch=0,
            grid=grid,
            in_specs=[pl.BlockSpec((tile_rows, w), lambda i: (i, 0))],
            out_specs=pl.BlockSpec((tile_rows, w), lambda i: (i, 0)),
        ),
        compiler_params=pltpu.CompilerParams(
            dimension_semantics=("parallel",),
            vmem_limit_bytes=32 * 1024 * 1024,
        ),
        cost_estimate=cost,
    )(x2)

    out_flat = out.reshape(-1)
    if pad:
        out_flat = out_flat[:n]
    return out_flat.reshape(orig_shape)


def gelu_ref(x):
    # Pure-JAX reference matching the PyTorch module exactly.
    return 0.5 * x * (1.0 + jnp.tanh(
        SQRT_2_OVER_PI * (x + GELU_COEFF * jnp.power(x, 3))))


if __name__ == "__main__":
    key = jax.random.PRNGKey(0)
    # Small shape consistent with typical usage: (batch=2, seq=8, hidden=128)
    x = jax.random.normal(key, (2, 8, 128), dtype=jnp.float32)

    y = jax.block_until_ready(gelu(x))
    y_ref = gelu_ref(x)

    assert y.shape == x.shape and y.dtype == x.dtype
    assert jnp.allclose(y, y_ref, atol=1e-5, rtol=1e-5), "mismatch vs reference"

    print("KERNEL_OK")
</pallas_src>

<mosaic_0001>
module attributes {stable_mosaic.version = 11 : i64} {
  func.func @_gelu_kernel(%arg0: i32, %arg1: memref<1x2048xf32, #tpu.memory_space<vmem>>, %arg2: memref<1x2048xf32, #tpu.memory_space<vmem>>) attributes {dimension_semantics = [#tpu.dimension_semantics<parallel>], iteration_bounds = array<i64: 1>, scalar_prefetch = 0 : i64, scratch_operands = 0 : i64, tpu.core_type = #tpu.core_type<tc>, window_params = [{transform_indices = @transform_0, window_bounds = array<i64: 1, 2048>}, {transform_indices = @transform_1, window_bounds = array<i64: 1, 2048>}]} {
    %c0 = arith.constant 0 : index
    %c0_0 = arith.constant 0 : index
    %0 = vector.load %arg1[%c0, %c0_0] : memref<1x2048xf32, #tpu.memory_space<vmem>>, vector<1x2048xf32>
    %1 = arith.mulf %0, %0 : vector<1x2048xf32>
    %cst = arith.constant 0.0356774069 : f32
    %2 = vector.broadcast %cst : f32 to vector<1x2048xf32>
    %3 = arith.mulf %2, %1 : vector<1x2048xf32>
    %cst_1 = arith.constant 0.797884583 : f32
    %4 = vector.broadcast %cst_1 : f32 to vector<1x2048xf32>
    %5 = arith.addf %4, %3 : vector<1x2048xf32>
    %6 = arith.mulf %0, %5 : vector<1x2048xf32>
    %7 = math.tanh %6 : vector<1x2048xf32>
    %cst_2 = arith.constant 5.000000e-01 : f32
    %8 = vector.broadcast %cst_2 : f32 to vector<1x2048xf32>
    %9 = arith.mulf %8, %7 : vector<1x2048xf32>
    %cst_3 = arith.constant 5.000000e-01 : f32
    %10 = vector.broadcast %cst_3 : f32 to vector<1x2048xf32>
    %11 = arith.addf %10, %9 : vector<1x2048xf32>
    %12 = arith.mulf %0, %11 : vector<1x2048xf32>
    %c0_4 = arith.constant 0 : index
    %c0_5 = arith.constant 0 : index
    %13 = vector.load %arg2[%c0_4, %c0_5] : memref<1x2048xf32, #tpu.memory_space<vmem>>, vector<1x2048xf32>
    tpu.vector_store %arg2[%c0_4, %c0_5], %12 {strides = array<i32>} : memref<1x2048xf32, #tpu.memory_space<vmem>>, vector<1x2048xf32>,
    return
  }
  func.func @transform_0(%arg0: i32) -> (i32, i32) {
    %c0_i32 = arith.constant 0 : i32
    %c0_i32_0 = arith.constant 0 : i32
    return %arg0, %c0_i32 : i32, i32
  }
  func.func @transform_1(%arg0: i32) -> (i32, i32) {
    %c0_i32 = arith.constant 0 : i32
    %c0_i32_0 = arith.constant 0 : i32
    return %arg0, %c0_i32 : i32, i32
  }
}

</mosaic_0001>

<bundles_post_ra>
// kernel: tpu_custom_call.1
= control target key start
LH: loop header
LB: loop body
LE: loop exit
PB: predicated region body
PF: predicated region fallthrough
CT: control target
= control target key end

     0   :  { %6 = vsyncpa [#allocation3], 0  ;;  %s124_s0 = inlined_call_operand.hbm [shape: f32[1,2048], index: 0, kind: input, shape index: {}]   ;;  %s125_s1 = inlined_call_operand.hbm [shape: f32[1,2048], index: 1, kind: output, shape index: {}]  }
   0x1   :  { %7 = vsyncpa [#allocation4], 0  ;;  %s106_s6 = smov [#allocation2]  }
   0x2   :  { %s14_s7 = sshll.u32 %s106_s6, 4  ;;  %s15_s7 = int_to_ptr.vmem [resolvable:$true] %s14_s7 }
   0x3   :  { %s70_s8 = scalar_lea.vmem %s15_s7, 256  ;;  %p75_p1 = scmp.lt.s32.totalorder %s15_s7, %s15_s7 }
   0x4   :  { %p71_p0 = scmp.ne.s32.totalorder %s15_s7, %s70_s8  ;;  %p76_p2 = scmp.lt.s32.totalorder %s70_s8, %s70_s8 }
   0x6   :  { %p77_p3 = por %p76_p2, %p75_p1 }
   0x8   :  { %p78_p4 = pnand %p77_p3, %p71_p0 }
   0xa   :  { %81 = shalt.err (!%p78_p4)
}
   0xb   :  { %17 = dma.hbm_to_vmem [thread:$0]  %s124_s0, 256, %s15_s7, [#allocation3]  }
   0xc   :  { %102 = dma.done.wait [#allocation3], 256  }
   0xd   :  { %103 = vsyncadd [#allocation3], 4294967040  ;;  %v21_v0 = vld [vmem:[#allocation2] sm:$0xff]  ;;  %v22_v1 = vld [vmem:[#allocation2 + $0x8] sm:$0xff]  ;;  %s107_s0 = smov [#allocation5]  }
   0xe   :  { %v23_v2 = vmul.f32 %v21_v0, %v21_v0  ;;  %v24_v3 = vmul.f32 %v22_v1, %v22_v1  ;;  %s47_s11 = sshll.u32 %s107_s0, 4  ;;  %s48_s11 = int_to_ptr.vmem [resolvable:$true] %s47_s11 }
   0xf   :  { %s82_s12 = scalar_lea.vmem %s48_s11, 256  ;;  %p87_p6 = scmp.lt.s32.totalorder %s48_s11, %s48_s11 }
  0x10   :  { %v25_v4 = vmul.f32 0.035677407, %v23_v2  ;;  %v26_v5 = vmul.f32 0.035677407, %v24_v3  ;;  %p83_p5 = scmp.ne.s32.totalorder %s48_s11, %s82_s12  ;;  %p88_p7 = scmp.lt.s32.totalorder %s82_s12, %s82_s12 }
  0x12   :  { %v27_v6 = vadd.f32 0.7978846, %v25_v4  ;;  %v28_v7 = vadd.f32 0.7978846, %v26_v5  ;;  %p89_p8 = por %p88_p7, %p87_p6 }
  0x14   :  { %v29_v8 = vmul.f32 %v27_v6, %v21_v0  ;;  %v30_v9 = vmul.f32 %v28_v7, %v22_v1  ;;  %p90_p9 = pnand %p89_p8, %p83_p5 }
  0x16   :  { %58 = vtanh.f32 %v29_v8 }
  0x17   :  { %60 = vtanh.f32 %v30_v9 }
  0x23   :  { %v59_v10 = vpop.eup %58 }
  0x24   :  { %v61_v11 = vpop.eup %60  ;;  %v33_v12 = vmul.f32 0.5, %v59_v10 }
  0x25   :  { %v34_v13 = vmul.f32 0.5, %v61_v11 }
  0x26   :  { %v35_v14 = vadd.f32 0.5, %v33_v12 }
  0x27   :  { %v36_v15 = vadd.f32 0.5, %v34_v13 }
  0x28   :  { %v37_v16 = vmul.f32 %v35_v14, %v21_v0 }
  0x29   :  { %v38_v17 = vmul.f32 %v36_v15, %v22_v1 }
  0x2a   :  { %39 = vst [vmem:[#allocation5] sm:$0xff] %v37_v16 }
  0x2b   :  { %40 = vst [vmem:[#allocation5 + $0x8] sm:$0xff] %v38_v17 }
  0x2c   :  { %93 = shalt.err (!%p90_p9)
}
  0x2d   :  { %50 = dma.vmem_to_hbm [thread:$0]  %s48_s11, 256, %s125_s1, [#allocation4]  }
  0x2e   :  { %104 = dma.done.wait [#allocation4], 256  }
  0x2f   :  { %105 = vsyncadd [#allocation4], 4294967040 }
  0x30   :  { %54 = vsyncpa [#allocation3], 1 }
  0x31   :  { %55 = vsyncpa [#allocation4], 1 }

</bundles_post_ra>
